<compile_context>
chip_gen: v7x
topology: tpu7x:2x2x1
jax: 0.10.0
libtpu: 0.0.40
codegen_flags: <defaults>
</compile_context>

<pallas_src>
import jax
import jax.numpy as jnp
from jax import lax
from jax.experimental import pallas as pl
from jax.experimental.pallas import tpu as pltpu

_LANES = 128
_ROW_TILE = 1024                 # rows per grid step (multiple of 8); 512 KiB f32 tile
_FAST_PATH_MAX_ROWS = 2048       # <= 1 MiB f32 slab -> single fused kernel
_N_CORES = 2                     # pass-1 reduction split for v7x megacore
_VMEM_LIMIT = 32 * 1024 * 1024


# ---------------------------------------------------------------------------
# Fast path: whole slab resident in VMEM, one launch, 2N bytes of HBM traffic.
# ---------------------------------------------------------------------------
def _fused_softmax_kernel(x_ref, o_ref):
    x_exp = jnp.exp(x_ref[...].astype(jnp.float32))
    inv = 1.0 / jnp.sum(x_exp)
    o_ref[...] = (x_exp * inv).astype(o_ref.dtype)


# ---------------------------------------------------------------------------
# Pass 1 (large path): per-core partial sums of exp(x).  Nothing but the tiny
# partial-sum block is written back (no exp intermediate in HBM).
# ---------------------------------------------------------------------------
def _make_sum_kernel(tiles_per_core, row_tile, rows_valid, needs_mask):
    def kernel(x_ref, psum_ref):
        t = pl.program_id(1)

        @pl.when(t == 0)
        def _init():
            psum_ref[...] = jnp.zeros_like(psum_ref)

        x = x_ref[...].astype(jnp.float32)
        if needs_mask:
            # Mask rows past the end of the slab: covers the partial last tile
            # and the replicated tile a core sees when the tile count is odd.
            g = pl.program_id(0) * tiles_per_core + t          # global tile id
            row = lax.broadcasted_iota(jnp.int32, x.shape, 0)
            x = jnp.where(g * row_tile + row < rows_valid, x, -jnp.inf)
        psum_ref[...] += jnp.sum(jnp.exp(x))                    # broadcast into (8,128)

    return kernel


# ---------------------------------------------------------------------------
# Pass 2 (large path): out = exp(x) * (1/partition).  exp is recomputed on the
# EUP instead of round-tripping the intermediate through HBM (4N -> 3N bytes).
# ---------------------------------------------------------------------------
def _scale_kernel(inv_ref, x_ref, o_ref):
    inv = inv_ref[0]                                            # SMEM scalar
    o_ref[...] = (jnp.exp(x_ref[...].astype(jnp.float32)) * inv).astype(o_ref.dtype)


def my_softmax(x):
    """Global-partition softmax, identical to the PyTorch MySoftmax.forward."""
    orig_shape = x.shape
    orig_dtype = x.dtype
    total = int(x.size)

    # ---- lane-dense (rows, 128) view; pad only the sub-128 remainder --------
    flat = x.reshape(-1)
    rows = -(-total // _LANES)
    pad = rows * _LANES - total
    if pad:
        # exp(-inf) == 0 exactly, so padding never perturbs the partition.
        # TODO(synk): for large lane-ragged inputs this concatenate costs one
        # extra copy of x; an in-kernel 1-D tail mask would remove it.
        flat = jnp.concatenate([flat, jnp.full((pad,), -jnp.inf, dtype=flat.dtype)])
    x2d = flat.reshape(rows, _LANES)

    if rows <= _FAST_PATH_MAX_ROWS:
        # -------- small-array fast path: one launch, everything in VMEM ------
        out2d = pl.pallas_call(
            _fused_softmax_kernel,
            out_shape=jax.ShapeDtypeStruct((rows, _LANES), orig_dtype),
        )(x2d)
    else:
        # -------- pass 1: exp + global sum, split across TensorCores ---------
        tiles_total = -(-rows // _ROW_TILE)
        tiles_per_core = -(-tiles_total // _N_CORES)
        needs_mask = (rows % _ROW_TILE != 0) or (tiles_total % _N_CORES != 0)

        def x_index_map(c, t):
            # Clamp so a core's dead trailing tile still DMAs in-bounds data;
            # its contribution is masked to zero inside the kernel.
            return (jnp.minimum(c * tiles_per_core + t, tiles_total - 1), 0)

        partials = pl.pallas_call(
            _make_sum_kernel(tiles_per_core, _ROW_TILE, rows, needs_mask),
            out_shape=jax.ShapeDtypeStruct((_N_CORES * 8, _LANES), jnp.float32),
            grid=(_N_CORES, tiles_per_core),
            in_specs=[pl.BlockSpec((_ROW_TILE, _LANES), x_index_map)],
            out_specs=pl.BlockSpec((8, _LANES), lambda c, t: (c, 0)),
            compiler_params=pltpu.CompilerParams(
                dimension_semantics=("parallel", "arbitrary"),
                vmem_limit_bytes=_VMEM_LIMIT,
            ),
        )(x2d)

        # Combine per-core partials + hoist the reciprocal (trivial XLA scalars).
        inv = (1.0 / jnp.sum(partials[::8, 0])).astype(jnp.float32).reshape(1)

        # -------- pass 2: out = exp(x) * inv, row tiles in parallel ----------
        out2d = pl.pallas_call(
            _scale_kernel,
            out_shape=jax.ShapeDtypeStruct((rows, _LANES), orig_dtype),
            grid=(tiles_total,),
            in_specs=[
                pl.BlockSpec(memory_space=pltpu.MemorySpace.SMEM),   # inv scalar
                pl.BlockSpec((_ROW_TILE, _LANES), lambda i: (i, 0)),
            ],
            out_specs=pl.BlockSpec((_ROW_TILE, _LANES), lambda i: (i, 0)),
            compiler_params=pltpu.CompilerParams(
                dimension_semantics=("parallel",),
                vmem_limit_bytes=_VMEM_LIMIT,
            ),
        )(inv, x2d)

    if pad:
        return out2d.reshape(-1)[:total].reshape(orig_shape)
    return out2d.reshape(orig_shape)


if __name__ == "__main__":
    key = jax.random.PRNGKey(0)
    k1, k2, k3 = jax.random.split(key, 3)

    # Case 1: NCHW-style input consistent with the module (fast path, aligned).
    x = jax.random.normal(k1, (2, 4, 16, 16), dtype=jnp.float32)
    out = jax.block_until_ready(my_softmax(x))
    x_exp = jnp.exp(x)
    ref = x_exp / jnp.sum(x_exp)
    assert out.shape == x.shape and out.dtype == x.dtype
    assert jnp.allclose(out, ref, atol=1e-8, rtol=1e-5), "mismatch (NCHW case)"

    # Case 2: not a multiple of 128 -> exercises the -inf lane padding path.
    x2 = jax.random.normal(k2, (5, 100), dtype=jnp.float32)
    out2 = jax.block_until_ready(my_softmax(x2))
    x2_exp = jnp.exp(x2)
    ref2 = x2_exp / jnp.sum(x2_exp)
    assert jnp.allclose(out2, ref2, atol=1e-8, rtol=1e-5), "mismatch (padded case)"

    # Case 3: large enough for the two-pass path, with a partial last row tile
    # and an odd tile count (exercises in-kernel masking + core split).
    x3 = jax.random.normal(k3, (2600, 130), dtype=jnp.float32)
    out3 = jax.block_until_ready(my_softmax(x3))
    x3_exp = jnp.exp(x3)
    ref3 = x3_exp / jnp.sum(x3_exp)
    assert jnp.allclose(out3, ref3, rtol=1e-4, atol=0.0), "mismatch (two-pass case)"

    print("KERNEL_OK")
</pallas_src>

<mosaic_0001>
module attributes {stable_mosaic.version = 11 : i64} {
  func.func @_fused_softmax_kernel(%arg0: memref<16x128xf32, #tpu.memory_space<vmem>>, %arg1: memref<16x128xf32, #tpu.memory_space<vmem>>) attributes {dimension_semantics = [], scalar_prefetch = 0 : i64, scratch_operands = 0 : i64, tpu.core_type = #tpu.core_type<tc>} {
    %c0 = arith.constant 0 : index
    %c0_0 = arith.constant 0 : index
    %0 = vector.load %arg0[%c0, %c0_0] : memref<16x128xf32, #tpu.memory_space<vmem>>, vector<16x128xf32>
    %1 = math.exp %0 : vector<16x128xf32>
    %2 = vector.shape_cast %1 : vector<16x128xf32> to vector<1x16x128xf32>
    %cst = arith.constant dense<0.000000e+00> : vector<1xf32>
    %3 = vector.multi_reduction <add>, %2, %cst [1, 2] : vector<1x16x128xf32> to vector<1xf32>
    %4 = vector.shape_cast %3 : vector<1xf32> to vector<1x1x1xf32>
    %5 = vector.extract %4[0, 0, 0] : f32 from vector<1x1x1xf32>
    %cst_1 = arith.constant 1.000000e+00 : f32
    %6 = arith.divf %cst_1, %5 : f32
    %7 = vector.broadcast %6 : f32 to vector<16x128xf32>
    %8 = arith.mulf %1, %7 : vector<16x128xf32>
    %c0_2 = arith.constant 0 : index
    %c0_3 = arith.constant 0 : index
    %9 = vector.load %arg1[%c0_2, %c0_3] : memref<16x128xf32, #tpu.memory_space<vmem>>, vector<16x128xf32>
    tpu.vector_store %arg1[%c0_2, %c0_3], %8 {strides = array<i32>} : memref<16x128xf32, #tpu.memory_space<vmem>>, vector<16x128xf32>,
    return
  }
}

</mosaic_0001>

<bundles_post_ra>
// kernel: tpu_custom_call.1
= control target key start
LH: loop header
LB: loop body
LE: loop exit
PB: predicated region body
PF: predicated region fallthrough
CT: control target
= control target key end

     0   :  { %6 = vsyncpa [#allocation3], 0  ;;  %s170_s0 = inlined_call_operand.hbm [shape: f32[16,128], index: 0, kind: input, shape index: {}]   ;;  %s171_s1 = inlined_call_operand.hbm [shape: f32[16,128], index: 1, kind: output, shape index: {}]  }
   0x1   :  { %7 = vsyncpa [#allocation4], 0  ;;  %s126_s6 = smov [#allocation2]   ;;  %s78_s10 = scalar_lea.hbm %s170_s0, 256 }
   0x2   :  { %s13_s7 = sshll.u32 %s126_s6, 4  ;;  %p79_p0 = scmp.ne.s32.totalorder %s170_s0, %s78_s10  ;;  %s14_s7 = int_to_ptr.vmem [resolvable:$true] %s13_s7 }
   0x3   :  { %p82_p1 = scmp.lt.u32.totalorder %s78_s10, %s170_s0 }
   0x5   :  { %p84_p2 = pnand %p82_p1, %p79_p0 }
   0x7   :  { %87 = shalt.err (!%p84_p2)
}
   0x8   :  { %s88_s15 = scalar_lea.vmem %s14_s7, 256  ;;  %p93_p4 = scmp.lt.s32.totalorder %s14_s7, %s14_s7 }
   0x9   :  { %p89_p3 = scmp.ne.s32.totalorder %s14_s7, %s88_s15  ;;  %p94_p5 = scmp.lt.s32.totalorder %s88_s15, %s88_s15 }
   0xb   :  { %p95_p6 = por %p94_p5, %p93_p4 }
   0xd   :  { %p96_p7 = pnand %p95_p6, %p89_p3 }
   0xf   :  { %99 = shalt.err (!%p96_p7)
}
  0x10   :  { %s127_s16 = smov 128   ;;  %s128_s17 = smov 8  }
  0x11   :  { %19 = dma.hbm_to_vmem [thread:$0]  %s170_s0, 256, %s14_s7, [#allocation3], %s127_s16, %s127_s16, %s128_s17  }
  0x12   :  { %122 = dma.done.wait [#allocation3], 256  }
  0x13   :  { %123 = vsyncadd [#allocation3], 4294967040  ;;  %v23_v0 = vld [vmem:[#allocation2] sm:$0xff]  ;;  %v24_v1 = vld [vmem:[#allocation2 + $0x8] sm:$0xff]  ;;  %s129_s20 = smov [#allocation5]  }
  0x14   :  { %v25_v2 = vmul.f32 1.442695, %v23_v0  ;;  %v27_v3 = vmul.f32 1.442695, %v24_v1  ;;  %s52_s21 = sshll.u32 %s129_s20, 4  ;;  %s53_s21 = int_to_ptr.vmem [resolvable:$true] %s52_s21 }
  0x15   :  { %s100_s23 = scalar_lea.vmem %s53_s21, 256  ;;  %p105_p9 = scmp.lt.s32.totalorder %s53_s21, %s53_s21 }
  0x16   :  { %72 = vpow2.f32 %v25_v2  ;;  %p101_p8 = scmp.ne.s32.totalorder %s53_s21, %s100_s23  ;;  %p106_p10 = scmp.lt.s32.totalorder %s100_s23, %s100_s23 }
  0x17   :  { %74 = vpow2.f32 %v27_v3 }
  0x18   :  { %p107_p11 = por %p106_p10, %p105_p9 }
  0x1a   :  { %p108_p12 = pnand %p107_p11, %p101_p8 }
  0x20   :  { %v73_v4 = vpop.eup %72 }
  0x21   :  { %v75_v5 = vpop.eup %74 }
  0x22   :  { %v29_v6 = vadd.f32 %v75_v5, %v73_v4 }
  0x24   :  { %30 = vadd.xlane.f32.xlu0 %v29_v6 }
  0xb1   :  { %v31_v7 = vpop.xlane.xlu0 %30 }
  0xb2   :  { %v32_v8 = vrot.slane %v31_v7, 4 }
  0xb4   :  { %v33_v9 = vadd.f32 %v32_v8, %v31_v7 }
  0xb6   :  { %v34_v10 = vrot.slane %v33_v9, 2 }
  0xb8   :  { %v35_v11 = vadd.f32 %v34_v10, %v33_v9 }
  0xba   :  { %v36_v12 = vrot.slane %v35_v11, 1 }
  0xbc   :  { %v37_v13 = vadd.f32 %v36_v12, %v35_v11 }
  0xbe   :  { %64 = vpush %v37_v13 }
  0xef   :  { %s65_s0 = spop %64 }
  0xf0   :  { %v39_v14 = vstv %s65_s0 }
  0xf1   :  { %76 = vrcp.f32 %v39_v14 }
  0xfb   :  { %v77_v15 = vpop.eup %76 }
  0xfc   :  { %66 = vpush %v77_v15 }
 0x12d   :  { %s67_s22 = spop %66 }
 0x12e   :  { %v42_v16 = vstv %s67_s22 }
 0x12f   :  { %v43_v17 = vmul.f32 %v73_v4, %v42_v16  ;;  %v44_v18 = vmul.f32 %v75_v5, %v42_v16 }
 0x131   :  { %45 = vst [vmem:[#allocation5] sm:$0xff] %v43_v17  ;;  %46 = vst [vmem:[#allocation5 + $0x8] sm:$0xff] %v44_v18 }
 0x132   :  { %111 = shalt.err (!%p108_p12)
}
 0x133   :  { %s112_s26 = scalar_lea.hbm %s171_s1, 256 }
 0x134   :  { %p113_p13 = scmp.ne.s32.totalorder %s171_s1, %s112_s26  ;;  %p116_p0 = scmp.lt.u32.totalorder %s112_s26, %s171_s1 }
 0x136   :  { %p118_p1 = pnand %p116_p0, %p113_p13 }
 0x138   :  { %121 = shalt.err (!%p118_p1)
}
 0x139   :  { %58 = dma.vmem_to_hbm [thread:$0]  %s53_s21, 256, %s171_s1, [#allocation4], %s127_s16, %s127_s16, %s128_s17  }
 0x13a   :  { %124 = dma.done.wait [#allocation4], 256  }
 0x13b   :  { %125 = vsyncadd [#allocation4], 4294967040 }
 0x13c   :  { %62 = vsyncpa [#allocation3], 1 }
 0x13d   :  { %63 = vsyncpa [#allocation4], 1 }

</bundles_post_ra>
